<compile_context>
chip_gen: v7x
topology: tpu7x:2x2x1
jax: 0.10.0
libtpu: 0.0.40
codegen_flags: <defaults>
</compile_context>

<pallas_src>
import functools

import jax
import jax.numpy as jnp
from jax import lax
from jax.experimental import pallas as pl
from jax.experimental.pallas import tpu as pltpu

_INV_SQRT2 = 0.7071067811865476  # 1/sqrt(2)
_LANE = 128
_SUBLANE = 8


def _round_up(x, m):
    return ((x + m - 1) // m) * m


def _fused_dnn_kernel(x_ref, *refs, num_layers, residual_flags, compute_dtype):
    """Fused [Linear -> exact-erf GELU -> optional residual] x num_layers.

    x_ref         : (TB, P_in0)        activation tile, f32, lane-padded
    refs[:L]      : (P_prev_i, P_out_i) per-layer weights (compute_dtype, zero-padded)
    refs[L:2L]    : (1, P_out_i)        per-layer biases  (f32, zero-padded)
    refs[2L]      : (TB, P_out_last)    output tile (x.dtype)
    """
    w_refs = refs[:num_layers]
    b_refs = refs[num_layers:2 * num_layers]
    o_ref = refs[2 * num_layers]

    h = x_ref[...].astype(jnp.float32)
    for l in range(num_layers):
        # MXU matmul: bf16 (or f32) operands, f32 accumulation.
        y = jnp.dot(h.astype(compute_dtype), w_refs[l][...],
                    preferred_element_type=jnp.float32)
        y = y + b_refs[l][...]
        # nn.GELU() default = exact erf-based GELU.  (tanh approx would route to the EUP
        # slot and free VALU, but changes numerics vs the PyTorch module -> keep exact.)
        y = 0.5 * y * (1.0 + lax.erf(y * _INV_SQRT2))
        if residual_flags[l]:          # static python bool, mirrors x.shape == out.shape
            y = y + h                  # padded lanes are 0 on both sides -> stays exact
        h = y
    o_ref[...] = h.astype(o_ref.dtype)


def make_dummy_dnn_forward(params, use_shortcut, *, weight_dtype=jnp.bfloat16, max_tile=256):
    """Pads/stacks parameters ONCE and returns a jitted forward(x) closure.

    Mirrors DummyDNN.forward (minus the debug prints) with all layers fused into a single
    pallas_call.
    """
    num_layers = len(params)
    dims_in = [int(w.shape[0]) for (w, _) in params]
    dims_out = [int(w.shape[1]) for (w, _) in params]
    for i in range(1, num_layers):
        assert dims_in[i] == dims_out[i - 1], "layer_sizes must chain"

    # Residual fires when the true (unpadded) in/out widths match (PyTorch shape check).
    residual_flags = tuple(
        bool(use_shortcut and dims_in[i] == dims_out[i]) for i in range(num_layers)
    )

    # Per-layer lane-dense padded widths.
    p_in0 = _round_up(dims_in[0], _LANE)
    p_out = [_round_up(d, _LANE) for d in dims_out]
    p_prev = [p_in0] + p_out[:-1]

    # ---- one-time padding (hoisted out of the per-call path) ----
    padded_ws, padded_bs = [], []
    for i, (w, b) in enumerate(params):
        wp = jnp.zeros((p_prev[i], p_out[i]), weight_dtype)
        wp = wp.at[: dims_in[i], : dims_out[i]].set(w.astype(weight_dtype))
        bp = jnp.zeros((1, p_out[i]), jnp.float32)
        bp = bp.at[0, : dims_out[i]].set(b.astype(jnp.float32))
        padded_ws.append(wp)
        padded_bs.append(bp)
    padded_ws = tuple(padded_ws)
    padded_bs = tuple(padded_bs)

    kernel = functools.partial(
        _fused_dnn_kernel,
        num_layers=num_layers,
        residual_flags=residual_flags,
        compute_dtype=weight_dtype,
    )

    # Resident (grid-invariant) weights/biases: constant index_map + single buffer.
    w_specs = [pl.BlockSpec(wp.shape, lambda i: (0, 0), pipeline_mode=pl.Buffered(1))
               for wp in padded_ws]
    b_specs = [pl.BlockSpec(bp.shape, lambda i: (0, 0), pipeline_mode=pl.Buffered(1))
               for bp in padded_bs]

    def forward(x):
        B, d0 = x.shape
        assert d0 == dims_in[0]
        out_dtype = x.dtype

        # ---- batch tiling: big tiles to feed the MXU, >=2 tiles when B allows (v7x 2 TCs) ----
        if B <= _SUBLANE:
            TB = B                      # single full-array tile, no batch padding needed
        elif B <= 2 * max_tile:
            TB = _round_up(-(-B // 2), _SUBLANE)   # aim for exactly 2 tiles
        else:
            TB = max_tile
        B_pad = _round_up(B, TB)

        xp = x.astype(jnp.float32)
        if (B_pad, p_in0) != (B, d0):
            xp = jnp.zeros((B_pad, p_in0), jnp.float32).at[:B, :d0].set(xp)

        # ---- explicit VMEM budget: resident weights/biases + double-buffered act tiles ----
        weight_bytes = sum(int(wp.size) * wp.dtype.itemsize for wp in padded_ws)
        bias_bytes = sum(int(bp.size) * bp.dtype.itemsize for bp in padded_bs)
        act_bytes = 2 * TB * p_in0 * 4 + 2 * TB * p_out[-1] * 4 + TB * max(p_out) * 4
        vmem_limit = int(min(2 * (weight_bytes + bias_bytes + act_bytes) + (2 << 20),
                             100 << 20))

        out_pad = pl.pallas_call(
            kernel,
            out_shape=jax.ShapeDtypeStruct((B_pad, p_out[-1]), out_dtype),
            grid=(B_pad // TB,),
            in_specs=[pl.BlockSpec((TB, p_in0), lambda i: (i, 0))] + w_specs + b_specs,
            out_specs=pl.BlockSpec((TB, p_out[-1]), lambda i: (i, 0)),
            compiler_params=pltpu.CompilerParams(
                dimension_semantics=("parallel",),
                vmem_limit_bytes=vmem_limit,
            ),
        )(xp, *padded_ws, *padded_bs)

        if (B_pad, p_out[-1]) != (B, dims_out[-1]):
            out_pad = out_pad[:B, : dims_out[-1]]
        return out_pad

    return jax.jit(forward)


def init_params(key, layer_sizes):
    """Deterministic parameter init (synthetic; not a checkpoint load)."""
    params = []
    for i in range(len(layer_sizes) - 1):
        din, dout = layer_sizes[i], layer_sizes[i + 1]
        key, kw, kb = jax.random.split(key, 3)
        bound = 1.0 / (din ** 0.5)
        w = jax.random.uniform(kw, (din, dout), jnp.float32, -bound, bound)
        b = jax.random.uniform(kb, (dout,), jnp.float32, -bound, bound)
        params.append((w, b))
    return params


def reference_forward(x, params, use_shortcut, matmul_dtype=jnp.float32):
    """Pure-JAX reference mirroring DummyDNN.forward.

    matmul_dtype=f32   -> module semantics (sanity check, loose tol vs bf16 kernel).
    matmul_dtype=bf16  -> precision-matched to the kernel (tight tol).
    """
    h = x.astype(jnp.float32)
    for (w, b) in params:
        y = jnp.dot(h.astype(matmul_dtype), w.astype(matmul_dtype),
                    preferred_element_type=jnp.float32) + b.astype(jnp.float32)
        y = 0.5 * y * (1.0 + lax.erf(y * _INV_SQRT2))
        if use_shortcut and h.shape == y.shape:
            h = h + y
        else:
            h = y
    return h.astype(x.dtype)


if __name__ == "__main__":
    key = jax.random.PRNGKey(0)
    batch = 8
    # First 5 sizes equal -> shortcuts fire on layers 1-4; last layer changes width.
    layer_sizes = [32, 32, 32, 32, 32, 16]
    use_shortcut = True

    key, kx = jax.random.split(key)
    x = jax.random.normal(kx, (batch, layer_sizes[0]), jnp.float32)
    params = init_params(key, layer_sizes)

    forward = make_dummy_dnn_forward(params, use_shortcut, weight_dtype=jnp.bfloat16)
    out = jax.block_until_ready(forward(x))

    assert out.shape == (batch, layer_sizes[-1])
    assert out.dtype == x.dtype

    # Precision-matched reference (same bf16 matmul operands, f32 accumulation): tight tolerance.
    ref_matched = reference_forward(x, params, use_shortcut, matmul_dtype=jnp.bfloat16)
    assert jnp.allclose(out, ref_matched, atol=2e-3, rtol=2e-3)

    # Pure-f32 module math: loose tolerance (bf16 weights on the MXU are an accepted approximation).
    ref_f32 = reference_forward(x, params, use_shortcut, matmul_dtype=jnp.float32)
    assert jnp.allclose(out, ref_f32, atol=1e-1, rtol=1e-1)

    print("KERNEL_OK")
</pallas_src>

<mosaic_0001>
module attributes {stable_mosaic.version = 11 : i64} {
  func.func @_fused_dnn_kernel(%arg0: i32, %arg1: memref<8x128xf32, #tpu.memory_space<vmem>>, %arg2: memref<128x128xbf16, #tpu.memory_space<vmem>>, %arg3: memref<128x128xbf16, #tpu.memory_space<vmem>>, %arg4: memref<128x128xbf16, #tpu.memory_space<vmem>>, %arg5: memref<128x128xbf16, #tpu.memory_space<vmem>>, %arg6: memref<128x128xbf16, #tpu.memory_space<vmem>>, %arg7: memref<1x128xf32, #tpu.memory_space<vmem>>, %arg8: memref<1x128xf32, #tpu.memory_space<vmem>>, %arg9: memref<1x128xf32, #tpu.memory_space<vmem>>, %arg10: memref<1x128xf32, #tpu.memory_space<vmem>>, %arg11: memref<1x128xf32, #tpu.memory_space<vmem>>, %arg12: memref<8x128xf32, #tpu.memory_space<vmem>>) attributes {dimension_semantics = [#tpu.dimension_semantics<parallel>], iteration_bounds = array<i64: 1>, scalar_prefetch = 0 : i64, scratch_operands = 0 : i64, tpu.core_type = #tpu.core_type<tc>, window_params = [{transform_indices = @transform_0, window_bounds = array<i64: 8, 128>}, {pipeline_mode = #tpu.pipeline_mode<synchronous>, transform_indices = @transform_1, window_bounds = array<i64: 128, 128>}, {pipeline_mode = #tpu.pipeline_mode<synchronous>, transform_indices = @transform_2, window_bounds = array<i64: 128, 128>}, {pipeline_mode = #tpu.pipeline_mode<synchronous>, transform_indices = @transform_3, window_bounds = array<i64: 128, 128>}, {pipeline_mode = #tpu.pipeline_mode<synchronous>, transform_indices = @transform_4, window_bounds = array<i64: 128, 128>}, {pipeline_mode = #tpu.pipeline_mode<synchronous>, transform_indices = @transform_5, window_bounds = array<i64: 128, 128>}, {pipeline_mode = #tpu.pipeline_mode<synchronous>, transform_indices = @transform_6, window_bounds = array<i64: 1, 128>}, {pipeline_mode = #tpu.pipeline_mode<synchronous>, transform_indices = @transform_7, window_bounds = array<i64: 1, 128>}, {pipeline_mode = #tpu.pipeline_mode<synchronous>, transform_indices = @transform_8, window_bounds = array<i64: 1, 128>}, {pipeline_mode = #tpu.pipeline_mode<synchronous>, transform_indices = @transform_9, window_bounds = array<i64: 1, 128>}, {pipeline_mode = #tpu.pipeline_mode<synchronous>, transform_indices = @transform_10, window_bounds = array<i64: 1, 128>}, {transform_indices = @transform_11, window_bounds = array<i64: 8, 128>}]} {
    %c0 = arith.constant 0 : index
    %c0_0 = arith.constant 0 : index
    %0 = vector.load %arg1[%c0, %c0_0] : memref<8x128xf32, #tpu.memory_space<vmem>>, vector<8x128xf32>
    %1 = arith.truncf %0 : vector<8x128xf32> to vector<8x128xbf16>
    %c0_1 = arith.constant 0 : index
    %c0_2 = arith.constant 0 : index
    %2 = vector.load %arg2[%c0_1, %c0_2] : memref<128x128xbf16, #tpu.memory_space<vmem>>, vector<128x128xbf16>
    %cst = arith.constant dense<0.000000e+00> : vector<8x128xf32>
    %3 = tpu.matmul %1, %2, %cst {dimension_numbers = #tpu.dot_dimension_numbers<[1], [0], [0], [1], [0, 0, 1, 1], [], []>} : vector<8x128xbf16>, vector<128x128xbf16>, vector<8x128xf32> -> vector<8x128xf32>
    %c0_3 = arith.constant 0 : index
    %c0_4 = arith.constant 0 : index
    %4 = vector.load %arg7[%c0_3, %c0_4] : memref<1x128xf32, #tpu.memory_space<vmem>>, vector<1x128xf32>
    %5 = vector.broadcast %4 : vector<1x128xf32> to vector<8x128xf32>
    %6 = arith.addf %3, %5 : vector<8x128xf32>
    %cst_5 = arith.constant 5.000000e-01 : f32
    %7 = vector.broadcast %cst_5 : f32 to vector<8x128xf32>
    %8 = arith.mulf %7, %6 : vector<8x128xf32>
    %cst_6 = arith.constant 0.707106769 : f32
    %9 = vector.broadcast %cst_6 : f32 to vector<8x128xf32>
    %10 = arith.mulf %6, %9 : vector<8x128xf32>
    %11 = math.erf %10 : vector<8x128xf32>
    %cst_7 = arith.constant 1.000000e+00 : f32
    %12 = vector.broadcast %cst_7 : f32 to vector<8x128xf32>
    %13 = arith.addf %12, %11 : vector<8x128xf32>
    %14 = arith.mulf %8, %13 : vector<8x128xf32>
    %15 = arith.addf %14, %0 : vector<8x128xf32>
    %16 = arith.truncf %15 : vector<8x128xf32> to vector<8x128xbf16>
    %c0_8 = arith.constant 0 : index
    %c0_9 = arith.constant 0 : index
    %17 = vector.load %arg3[%c0_8, %c0_9] : memref<128x128xbf16, #tpu.memory_space<vmem>>, vector<128x128xbf16>
    %cst_10 = arith.constant dense<0.000000e+00> : vector<8x128xf32>
    %18 = tpu.matmul %16, %17, %cst_10 {dimension_numbers = #tpu.dot_dimension_numbers<[1], [0], [0], [1], [0, 0, 1, 1], [], []>} : vector<8x128xbf16>, vector<128x128xbf16>, vector<8x128xf32> -> vector<8x128xf32>
    %c0_11 = arith.constant 0 : index
    %c0_12 = arith.constant 0 : index
    %19 = vector.load %arg8[%c0_11, %c0_12] : memref<1x128xf32, #tpu.memory_space<vmem>>, vector<1x128xf32>
    %20 = vector.broadcast %19 : vector<1x128xf32> to vector<8x128xf32>
    %21 = arith.addf %18, %20 : vector<8x128xf32>
    %cst_13 = arith.constant 5.000000e-01 : f32
    %22 = vector.broadcast %cst_13 : f32 to vector<8x128xf32>
    %23 = arith.mulf %22, %21 : vector<8x128xf32>
    %cst_14 = arith.constant 0.707106769 : f32
    %24 = vector.broadcast %cst_14 : f32 to vector<8x128xf32>
    %25 = arith.mulf %21, %24 : vector<8x128xf32>
    %26 = math.erf %25 : vector<8x128xf32>
    %cst_15 = arith.constant 1.000000e+00 : f32
    %27 = vector.broadcast %cst_15 : f32 to vector<8x128xf32>
    %28 = arith.addf %27, %26 : vector<8x128xf32>
    %29 = arith.mulf %23, %28 : vector<8x128xf32>
    %30 = arith.addf %29, %15 : vector<8x128xf32>
    %31 = arith.truncf %30 : vector<8x128xf32> to vector<8x128xbf16>
    %c0_16 = arith.constant 0 : index
    %c0_17 = arith.constant 0 : index
    %32 = vector.load %arg4[%c0_16, %c0_17] : memref<128x128xbf16, #tpu.memory_space<vmem>>, vector<128x128xbf16>
    %cst_18 = arith.constant dense<0.000000e+00> : vector<8x128xf32>
    %33 = tpu.matmul %31, %32, %cst_18 {dimension_numbers = #tpu.dot_dimension_numbers<[1], [0], [0], [1], [0, 0, 1, 1], [], []>} : vector<8x128xbf16>, vector<128x128xbf16>, vector<8x128xf32> -> vector<8x128xf32>
    %c0_19 = arith.constant 0 : index
    %c0_20 = arith.constant 0 : index
    %34 = vector.load %arg9[%c0_19, %c0_20] : memref<1x128xf32, #tpu.memory_space<vmem>>, vector<1x128xf32>
    %35 = vector.broadcast %34 : vector<1x128xf32> to vector<8x128xf32>
    %36 = arith.addf %33, %35 : vector<8x128xf32>
    %cst_21 = arith.constant 5.000000e-01 : f32
    %37 = vector.broadcast %cst_21 : f32 to vector<8x128xf32>
    %38 = arith.mulf %37, %36 : vector<8x128xf32>
    %cst_22 = arith.constant 0.707106769 : f32
    %39 = vector.broadcast %cst_22 : f32 to vector<8x128xf32>
    %40 = arith.mulf %36, %39 : vector<8x128xf32>
    %41 = math.erf %40 : vector<8x128xf32>
    %cst_23 = arith.constant 1.000000e+00 : f32
    %42 = vector.broadcast %cst_23 : f32 to vector<8x128xf32>
    %43 = arith.addf %42, %41 : vector<8x128xf32>
    %44 = arith.mulf %38, %43 : vector<8x128xf32>
    %45 = arith.addf %44, %30 : vector<8x128xf32>
    %46 = arith.truncf %45 : vector<8x128xf32> to vector<8x128xbf16>
    %c0_24 = arith.constant 0 : index
    %c0_25 = arith.constant 0 : index
    %47 = vector.load %arg5[%c0_24, %c0_25] : memref<128x128xbf16, #tpu.memory_space<vmem>>, vector<128x128xbf16>
    %cst_26 = arith.constant dense<0.000000e+00> : vector<8x128xf32>
    %48 = tpu.matmul %46, %47, %cst_26 {dimension_numbers = #tpu.dot_dimension_numbers<[1], [0], [0], [1], [0, 0, 1, 1], [], []>} : vector<8x128xbf16>, vector<128x128xbf16>, vector<8x128xf32> -> vector<8x128xf32>
    %c0_27 = arith.constant 0 : index
    %c0_28 = arith.constant 0 : index
    %49 = vector.load %arg10[%c0_27, %c0_28] : memref<1x128xf32, #tpu.memory_space<vmem>>, vector<1x128xf32>
    %50 = vector.broadcast %49 : vector<1x128xf32> to vector<8x128xf32>
    %51 = arith.addf %48, %50 : vector<8x128xf32>
    %cst_29 = arith.constant 5.000000e-01 : f32
    %52 = vector.broadcast %cst_29 : f32 to vector<8x128xf32>
    %53 = arith.mulf %52, %51 : vector<8x128xf32>
    %cst_30 = arith.constant 0.707106769 : f32
    %54 = vector.broadcast %cst_30 : f32 to vector<8x128xf32>
    %55 = arith.mulf %51, %54 : vector<8x128xf32>
    %56 = math.erf %55 : vector<8x128xf32>
    %cst_31 = arith.constant 1.000000e+00 : f32
    %57 = vector.broadcast %cst_31 : f32 to vector<8x128xf32>
    %58 = arith.addf %57, %56 : vector<8x128xf32>
    %59 = arith.mulf %53, %58 : vector<8x128xf32>
    %60 = arith.addf %59, %45 : vector<8x128xf32>
    %61 = arith.truncf %60 : vector<8x128xf32> to vector<8x128xbf16>
    %c0_32 = arith.constant 0 : index
    %c0_33 = arith.constant 0 : index
    %62 = vector.load %arg6[%c0_32, %c0_33] : memref<128x128xbf16, #tpu.memory_space<vmem>>, vector<128x128xbf16>
    %cst_34 = arith.constant dense<0.000000e+00> : vector<8x128xf32>
    %63 = tpu.matmul %61, %62, %cst_34 {dimension_numbers = #tpu.dot_dimension_numbers<[1], [0], [0], [1], [0, 0, 1, 1], [], []>} : vector<8x128xbf16>, vector<128x128xbf16>, vector<8x128xf32> -> vector<8x128xf32>
    %c0_35 = arith.constant 0 : index
    %c0_36 = arith.constant 0 : index
    %64 = vector.load %arg11[%c0_35, %c0_36] : memref<1x128xf32, #tpu.memory_space<vmem>>, vector<1x128xf32>
    %65 = vector.broadcast %64 : vector<1x128xf32> to vector<8x128xf32>
    %66 = arith.addf %63, %65 : vector<8x128xf32>
    %cst_37 = arith.constant 5.000000e-01 : f32
    %67 = vector.broadcast %cst_37 : f32 to vector<8x128xf32>
    %68 = arith.mulf %67, %66 : vector<8x128xf32>
    %cst_38 = arith.constant 0.707106769 : f32
    %69 = vector.broadcast %cst_38 : f32 to vector<8x128xf32>
    %70 = arith.mulf %66, %69 : vector<8x128xf32>
    %71 = math.erf %70 : vector<8x128xf32>
    %cst_39 = arith.constant 1.000000e+00 : f32
    %72 = vector.broadcast %cst_39 : f32 to vector<8x128xf32>
    %73 = arith.addf %72, %71 : vector<8x128xf32>
    %74 = arith.mulf %68, %73 : vector<8x128xf32>
    %c0_40 = arith.constant 0 : index
    %c0_41 = arith.constant 0 : index
    %75 = vector.load %arg12[%c0_40, %c0_41] : memref<8x128xf32, #tpu.memory_space<vmem>>, vector<8x128xf32>
    tpu.vector_store %arg12[%c0_40, %c0_41], %74 {strides = array<i32>} : memref<8x128xf32, #tpu.memory_space<vmem>>, vector<8x128xf32>,
    return
  }
  func.func @transform_0(%arg0: i32) -> (i32, i32) {
    %c0_i32 = arith.constant 0 : i32
    %c0_i32_0 = arith.constant 0 : i32
    return %arg0, %c0_i32 : i32, i32
  }
  func.func @transform_1(%arg0: i32) -> (i32, i32) {
    %c0_i32 = arith.constant 0 : i32
    %c0_i32_0 = arith.constant 0 : i32
    %c0_i32_1 = arith.constant 0 : i32
    return %c0_i32, %c0_i32_0 : i32, i32
  }
  func.func @transform_2(%arg0: i32) -> (i32, i32) {
    %c0_i32 = arith.constant 0 : i32
    %c0_i32_0 = arith.constant 0 : i32
    %c0_i32_1 = arith.constant 0 : i32
    return %c0_i32, %c0_i32_0 : i32, i32
  }
  func.func @transform_3(%arg0: i32) -> (i32, i32) {
    %c0_i32 = arith.constant 0 : i32
    %c0_i32_0 = arith.constant 0 : i32
    %c0_i32_1 = arith.constant 0 : i32
    return %c0_i32, %c0_i32_0 : i32, i32
  }
  func.func @transform_4(%arg0: i32) -> (i32, i32) {
    %c0_i32 = arith.constant 0 : i32
    %c0_i32_0 = arith.constant 0 : i32
    %c0_i32_1 = arith.constant 0 : i32
    return %c0_i32, %c0_i32_0 : i32, i32
  }
  func.func @transform_5(%arg0: i32) -> (i32, i32) {
    %c0_i32 = arith.constant 0 : i32
    %c0_i32_0 = arith.constant 0 : i32
    %c0_i32_1 = arith.constant 0 : i32
    return %c0_i32, %c0_i32_0 : i32, i32
  }
  func.func @transform_6(%arg0: i32) -> (i32, i32) {
    %c0_i32 = arith.constant 0 : i32
    %c0_i32_0 = arith.constant 0 : i32
    %c0_i32_1 = arith.constant 0 : i32
    return %c0_i32, %c0_i32_0 : i32, i32
  }
  func.func @transform_7(%arg0: i32) -> (i32, i32) {
    %c0_i32 = arith.constant 0 : i32
    %c0_i32_0 = arith.constant 0 : i32
    %c0_i32_1 = arith.constant 0 : i32
    return %c0_i32, %c0_i32_0 : i32, i32
  }
  func.func @transform_8(%arg0: i32) -> (i32, i32) {
    %c0_i32 = arith.constant 0 : i32
    %c0_i32_0 = arith.constant 0 : i32
    %c0_i32_1 = arith.constant 0 : i32
    return %c0_i32, %c0_i32_0 : i32, i32
  }
  func.func @transform_9(%arg0: i32) -> (i32, i32) {
    %c0_i32 = arith.constant 0 : i32
    %c0_i32_0 = arith.constant 0 : i32
    %c0_i32_1 = arith.constant 0 : i32
    return %c0_i32, %c0_i32_0 : i32, i32
  }
  func.func @transform_10(%arg0: i32) -> (i32, i32) {
    %c0_i32 = arith.constant 0 : i32
    %c0_i32_0 = arith.constant 0 : i32
    %c0_i32_1 = arith.constant 0 : i32
    return %c0_i32, %c0_i32_0 : i32, i32
  }
  func.func @transform_11(%arg0: i32) -> (i32, i32) {
    %c0_i32 = arith.constant 0 : i32
    %c0_i32_0 = arith.constant 0 : i32
    return %arg0, %c0_i32 : i32, i32
  }
}

</mosaic_0001>

<bundles_post_ra>
// kernel: forward.1
= control target key start
LH: loop header
LB: loop body
LE: loop exit
PB: predicated region body
PF: predicated region fallthrough
CT: control target
= control target key end

     0   :  { %16 = vsyncpa [#allocation3], 0  ;;  %s1317_s0 = inlined_call_operand.vmem [shape: f32[8,128], index: 0, kind: input, shape index: {}]   ;;  %s1318_s1 = inlined_call_operand.hbm [shape: bf16[128,128], index: 1, kind: input, shape index: {}]   ;;  %s1319_s2 = inlined_call_operand.hbm [shape: bf16[128,128], index: 2, kind: input, shape index: {}]   ;;  %s1320_s3 = inlined_call_operand.hbm [shape: bf16[128,128], index: 3, kind: input, shape index: {}]   ;;  %s1321_s4 = inlined_call_operand.hbm [shape: bf16[128,128], index: 4, kind: input, shape index: {}]   ;;  %s1322_s5 = inlined_call_operand.vmem [shape: bf16[128,128], index: 5, kind: input, shape index: {}]   ;;  %s1323_s6 = inlined_call_operand.vmem [shape: f32[1,128], index: 6, kind: input, shape index: {}]   ;;  %s1324_s7 = inlined_call_operand.vmem [shape: f32[1,128], index: 7, kind: input, shape index: {}]   ;;  %s1325_s8 = inlined_call_operand.vmem [shape: f32[1,128], index: 8, kind: input, shape index: {}]   ;;  %s1326_s9 = inlined_call_operand.vmem [shape: f32[1,128], index: 9, kind: input, shape index: {}]   ;;  %s1327_s10 = inlined_call_operand.vmem [shape: f32[1,128], index: 10, kind: input, shape index: {}]   ;;  %s1328_s11 = inlined_call_operand.hbm [shape: f32[8,128], index: 11, kind: output, shape index: {}]  }
   0x1   :  { %17 = vsyncpa [#allocation6], 0 }
   0x2   :  { %18 = vsyncpa [#allocation9], 0 }
   0x3   :  { %19 = vsyncpa [#allocation4], 0  ;;  %s1070_s17 = smov [#allocation5]   ;;  %s1071_s19 = smov [#allocation2]  }
   0x4   :  { %s39_s18 = sshll.u32 %s1070_s17, 4  ;;  %s27_s20 = sshll.u32 %s1071_s19, 4  ;;  %s40_s18 = int_to_ptr.vmem [resolvable:$true] %s39_s18  ;;  %s1139_s20 = int_to_ptr.vmem [resolvable:$true] %s27_s20 }
   0x5   :  { %s952_s23 = scalar_lea.hbm %s1319_s2, 1024 }
   0x6   :  { %p953_p0 = scmp.ne.s32.totalorder %s1319_s2, %s952_s23  ;;  %p956_p1 = scmp.lt.u32.totalorder %s952_s23, %s1319_s2 }
   0x8   :  { %p958_p2 = pnand %p956_p1, %p953_p0 }
   0xa   :  { %961 = shalt.err (!%p958_p2)
}
   0xb   :  { %s962_s28 = scalar_lea.vmem %s40_s18, 1024  ;;  %p967_p4 = scmp.lt.s32.totalorder %s40_s18, %s40_s18 }
   0xc   :  { %p963_p3 = scmp.ne.s32.totalorder %s40_s18, %s962_s28  ;;  %p968_p5 = scmp.lt.s32.totalorder %s962_s28, %s962_s28 }
   0xe   :  { %p969_p6 = por %p968_p5, %p967_p4 }
  0x10   :  { %p970_p7 = pnand %p969_p6, %p963_p3 }
  0x12   :  { %973 = shalt.err (!%p970_p7)
}
  0x13   :  { %s1072_s29 = smov 64   ;;  %s1073_s30 = smov 4  }
  0x14   :  { %45 = dma.hbm_to_vmem [thread:$0]  %s1319_s2, 1024, %s40_s18, [#allocation6], %s1072_s29, %s1072_s29, %s1073_s30  }
  0x15   :  { %s974_s16 = scalar_lea.hbm %s1318_s1, 1024 }
  0x16   :  { %p975_p8 = scmp.ne.s32.totalorder %s1318_s1, %s974_s16  ;;  %p978_p9 = scmp.lt.u32.totalorder %s974_s16, %s1318_s1 }
  0x18   :  { %p980_p10 = pnand %p978_p9, %p975_p8 }
  0x1a   :  { %983 = shalt.err (!%p980_p10)
}
  0x1b   :  { %s984_s23 = scalar_lea.vmem %s1139_s20, 1024  ;;  %p989_p12 = scmp.lt.s32.totalorder %s1139_s20, %s1139_s20 }
  0x1c   :  { %p985_p11 = scmp.ne.s32.totalorder %s1139_s20, %s984_s23  ;;  %p990_p13 = scmp.lt.s32.totalorder %s984_s23, %s984_s23 }
  0x1e   :  { %p991_p0 = por %p990_p13, %p989_p12 }
  0x20   :  { %p992_p1 = pnand %p991_p0, %p985_p11 }
  0x22   :  { %995 = shalt.err (!%p992_p1)
}
  0x23   :  { %33 = dma.hbm_to_vmem [thread:$0]  %s1318_s1, 1024, %s1139_s20, [#allocation3], %s1072_s29, %s1072_s29, %s1073_s30  }
  0x24   :  { %s1074_s24 = smov [#allocation7]   ;;  %s1075_s26 = smov [#allocation8]  }
  0x25   :  { %s51_s25 = sshll.u32 %s1074_s24, 4  ;;  %s63_s27 = sshll.u32 %s1075_s26, 4  ;;  %s52_s25 = int_to_ptr.vmem [resolvable:$true] %s51_s25  ;;  %s1176_s27 = int_to_ptr.vmem [resolvable:$true] %s63_s27 }
  0x26   :  { %s996_s13 = scalar_lea.hbm %s1320_s3, 1024 }
  0x27   :  { %p997_p2 = scmp.ne.s32.totalorder %s1320_s3, %s996_s13  ;;  %p1000_p3 = scmp.lt.u32.totalorder %s996_s13, %s1320_s3 }
  0x29   :  { %p1002_p4 = pnand %p1000_p3, %p997_p2 }
  0x2b   :  { %1005 = shalt.err (!%p1002_p4)
}
  0x2c   :  { %s1006_s1 = scalar_lea.vmem %s52_s25, 1024  ;;  %p1011_p6 = scmp.lt.s32.totalorder %s52_s25, %s52_s25 }
  0x2d   :  { %p1007_p5 = scmp.ne.s32.totalorder %s52_s25, %s1006_s1  ;;  %p1012_p7 = scmp.lt.s32.totalorder %s1006_s1, %s1006_s1 }
  0x2f   :  { %p1013_p8 = por %p1012_p7, %p1011_p6 }
  0x31   :  { %p1014_p9 = pnand %p1013_p8, %p1007_p5 }
  0x33   :  { %1017 = shalt.err (!%p1014_p9)
}
  0x34   :  { %57 = dma.hbm_to_vmem [thread:$0]  %s1320_s3, 1024, %s52_s25, [#allocation6], %s1072_s29, %s1072_s29, %s1073_s30  }
  0x35   :  { %s1018_s23 = scalar_lea.hbm %s1321_s4, 1024 }
  0x36   :  { %p1019_p10 = scmp.ne.s32.totalorder %s1321_s4, %s1018_s23  ;;  %p1022_p11 = scmp.lt.u32.totalorder %s1018_s23, %s1321_s4 }
  0x38   :  { %p1024_p12 = pnand %p1022_p11, %p1019_p10 }
  0x3a   :  { %1027 = shalt.err (!%p1024_p12)
}
  0x3b   :  { %s1028_s28 = scalar_lea.vmem %s1176_s27, 1024  ;;  %p1033_p0 = scmp.lt.s32.totalorder %s1176_s27, %s1176_s27 }
  0x3c   :  { %p1029_p13 = scmp.ne.s32.totalorder %s1176_s27, %s1028_s28  ;;  %p1034_p1 = scmp.lt.s32.totalorder %s1028_s28, %s1028_s28 }
  0x3e   :  { %p1035_p2 = por %p1034_p1, %p1033_p0 }
  0x40   :  { %p1036_p3 = pnand %p1035_p2, %p1029_p13 }
  0x42   :  { %1039 = shalt.err (!%p1036_p3)
}
  0x43   :  { %69 = dma.hbm_to_vmem [thread:$0]  %s1321_s4, 1024, %s1176_s27, [#allocation9], %s1072_s29, %s1072_s29, %s1073_s30  }
  0x44   :  { %1062 = dma.done.wait [#allocation3], 1024  }
  0x45   :  { %1063 = vsyncadd [#allocation3], 4294966272 }
  0x46   :  { %1064 = dma.done.wait [#allocation6], 2048  }
  0x47   :  { %1065 = vsyncadd [#allocation6], 4294965248 }
  0x48   :  { %1066 = dma.done.wait [#allocation9], 1024  }
  0x49   :  { %1067 = vsyncadd [#allocation9], 4294966272  ;;  %v1076_v0 = vmov 0.0   ;;  %vm1077_vm0 = vmmov 0   ;;  %v902_v1 = vld [vmem:[#allocation2] sm:$0xff]   ;;  %v903_v2 = vld [vmem:[#allocation2 + $0x8] sm:$0xff]  }
  0x4a   :  { %793 = vmatprep.subr.bf16.mxu0 %v1076_v0  ;;  %809 = vmatprep.mubr.msk.bf16.mxu0 %vm1077_vm0, %v1076_v0  ;;  %v904_v3 = vld [vmem:[#allocation2 + $0x10] sm:$0xff]   ;;  %v910_v4 = vld [vmem:[#allocation5] sm:$0xff]   ;;  %v905_v5 = vld [vmem:[#allocation2 + $0x18] sm:$0xff]  }
  0x4b   :  { %813 = vmatprep.subr.bf16.mxu1 %v1076_v0  ;;  %829 = vmatprep.mubr.msk.bf16.mxu1 %vm1077_vm0, %v1076_v0  ;;  %v911_v6 = vld [vmem:[#allocation5 + $0x8] sm:$0xff]   ;;  %v906_v7 = vld [vmem:[#allocation2 + $0x20] sm:$0xff]   ;;  %v908_v9 = vld [vmem:[#allocation2 + $0x30] sm:$0xff]  }
  0x4c   :  { %794 = vmatpush3.bf16.msra.mxu0 %v902_v1  ;;  %814 = vmatpush3.bf16.msra.mxu1 %v910_v4  ;;  %v907_v8 = vld [vmem:[#allocation2 + $0x28] sm:$0xff]   ;;  %v909_v10 = vld [vmem:[#allocation2 + $0x38] sm:$0xff]   ;;  %v95_v11 = vld [vmem:[%s1317_s0] sm:$0xff] }
  0x4d   :  { %795 = vmatprep.subr.bf16.mxu0 %v1076_v0  ;;  %815 = vmatprep.subr.bf16.mxu1 %v1076_v0  ;;  %v96_v12 = vpack.c.bf16 %v95_v11, %v95_v11  ;;  %v912_v13 = vld [vmem:[#allocation5 + $0x10] sm:$0xff]   ;;  %v913_v14 = vld [vmem:[#allocation5 + $0x18] sm:$0xff]   ;;  %v914_v15 = vld [vmem:[#allocation5 + $0x20] sm:$0xff]  }
  0x4e   :  { %v915_v16 = vld [vmem:[#allocation5 + $0x28] sm:$0xff]   ;;  %v916_v17 = vld [vmem:[#allocation5 + $0x30] sm:$0xff]   ;;  %v917_v18 = vld [vmem:[#allocation5 + $0x38] sm:$0xff]  }
  0x4f   :  { %v918_v19 = vld [vmem:[#allocation7] sm:$0xff]   ;;  %v919_v20 = vld [vmem:[#allocation7 + $0x8] sm:$0xff]   ;;  %v920_v34 = vld [vmem:[#allocation7 + $0x10] sm:$0xff]  }
  0x50   :  { %796 = vmatpush3.bf16.msra.mxu0 %v903_v2  ;;  %816 = vmatpush3.bf16.msra.mxu1 %v911_v6  ;;  %v703_v21 = vld [vmem:[%s1323_s6] ss:$0 sm:$0xff]  ;;  %v921_v35 = vld [vmem:[#allocation7 + $0x18] sm:$0xff]   ;;  %v923_v37 = vld [vmem:[#allocation7 + $0x28] sm:$0xff]  }
  0x51   :  { %797 = vmatprep.subr.bf16.mxu0 %v1076_v0  ;;  %817 = vmatprep.subr.bf16.mxu1 %v1076_v0  ;;  %v922_v36 = vld [vmem:[#allocation7 + $0x20] sm:$0xff]   ;;  %v924_v38 = vld [vmem:[#allocation7 + $0x30] sm:$0xff]   ;;  %v925_v39 = vld [vmem:[#allocation7 + $0x38] sm:$0xff]  }
  0x52   :  { %v926_v40 = vld [vmem:[#allocation8] sm:$0xff]   ;;  %v927_v41 = vld [vmem:[#allocation8 + $0x8] sm:$0xff]   ;;  %v928_v55 = vld [vmem:[#allocation8 + $0x10] sm:$0xff]  }
  0x53   :  { %v712_v42 = vld [vmem:[%s1324_s7] ss:$0 sm:$0xff]  ;;  %v929_v56 = vld [vmem:[#allocation8 + $0x18] sm:$0xff]   ;;  %v931_v58 = vld [vmem:[#allocation8 + $0x28] sm:$0xff]  }
  0x54   :  { %798 = vmatpush3.bf16.msra.mxu0 %v904_v3  ;;  %818 = vmatpush3.bf16.msra.mxu1 %v912_v13  ;;  %v930_v57 = vld [vmem:[#allocation8 + $0x20] sm:$0xff]   ;;  %v932_v59 = vld [vmem:[#allocation8 + $0x30] sm:$0xff]   ;;  %v933_v60 = vld [vmem:[#allocation8 + $0x38] sm:$0xff]  }
  0x55   :  { %799 = vmatprep.subr.bf16.mxu0 %v1076_v0  ;;  %819 = vmatprep.subr.bf16.mxu1 %v1076_v0  ;;  %v934_v61 = vld [vmem:[%s1322_s5] sm:$0xff]   ;;  %v935_v62 = vld [vmem:[%s1322_s5 + $0x8] sm:$0xff]   ;;  %v936_v13 = vld [vmem:[%s1322_s5 + $0x10] sm:$0xff]  }
  0x56   :  { %v721_v63 = vld [vmem:[%s1325_s8] ss:$0 sm:$0xff] }
  0x58   :  { %800 = vmatpush3.bf16.msra.mxu0 %v905_v5  ;;  %820 = vmatpush3.bf16.msra.mxu1 %v913_v14  ;;  %v937_v14 = vld [vmem:[%s1322_s5 + $0x18] sm:$0xff]  }
  0x59   :  { %801 = vmatprep.subr.bf16.mxu0 %v1076_v0  ;;  %821 = vmatprep.subr.bf16.mxu1 %v1076_v0 }
  0x5c   :  { %802 = vmatpush3.bf16.msra.mxu0 %v906_v7  ;;  %822 = vmatpush3.bf16.msra.mxu1 %v914_v15  ;;  %v938_v15 = vld [vmem:[%s1322_s5 + $0x20] sm:$0xff]  }
  0x5d   :  { %803 = vmatprep.subr.bf16.mxu0 %v1076_v0  ;;  %823 = vmatprep.subr.bf16.mxu1 %v1076_v0 }
  0x60   :  { %804 = vmatpush3.bf16.msra.mxu0 %v907_v8  ;;  %824 = vmatpush3.bf16.msra.mxu1 %v915_v16  ;;  %v939_v16 = vld [vmem:[%s1322_s5 + $0x28] sm:$0xff]  }
  0x61   :  { %805 = vmatprep.subr.bf16.mxu0 %v1076_v0  ;;  %825 = vmatprep.subr.bf16.mxu1 %v1076_v0 }
  0x64   :  { %806 = vmatpush3.bf16.msra.mxu0 %v908_v9  ;;  %826 = vmatpush3.bf16.msra.mxu1 %v916_v17  ;;  %v940_v17 = vld [vmem:[%s1322_s5 + $0x30] sm:$0xff]  }
  0x65   :  { %807 = vmatprep.subr.bf16.mxu0 %v1076_v0  ;;  %827 = vmatprep.subr.bf16.mxu1 %v1076_v0 }
  0x68   :  { %808 = vmatpush3.bf16.msra.mxu0 %v909_v10  ;;  %828 = vmatpush3.bf16.msra.mxu1 %v917_v18  ;;  %v941_v18 = vld [vmem:[%s1322_s5 + $0x38] sm:$0xff]  }
  0x69   :  { %833 = vmatprep.subr.bf16.mxu0 %v1076_v0  ;;  %853 = vmatprep.subr.bf16.mxu1 %v1076_v0 }
  0x6b   :  { %810 = vmatmul.mubr.bf16.vlgmr.msra.gmra.mrb[0].mxu0 %v96_v12 }
  0x6c   :  { %849 = vmatprep.mubr.msk.bf16.mxu0 %vm1077_vm0, %v1076_v0  ;;  %834 = vmatpush3.bf16.msra.mxu0 %v918_v19  ;;  %v730_v19 = vld [vmem:[%s1326_s9] ss:$0 sm:$0xff]  ;;  %s1078_s9 = smov [#allocation10]  }
  0x6d   :  { %835 = vmatprep.subr.bf16.mxu0 %v1076_v0  ;;  %s692_s4 = sshll.u32 %s1078_s9, 4  ;;  %s693_s4 = int_to_ptr.vmem [resolvable:$true] %s692_s4 }
  0x6e   :  { %s1040_s29 = scalar_lea.vmem %s693_s4, 128  ;;  %p1045_p5 = scmp.lt.s32.totalorder %s693_s4, %s693_s4 }
  0x6f   :  { %p1041_p4 = scmp.ne.s32.totalorder %s693_s4, %s1040_s29  ;;  %p1046_p6 = scmp.lt.s32.totalorder %s1040_s29, %s1040_s29 }
  0x70   :  { %836 = vmatpush3.bf16.msra.mxu0 %v919_v20 }
  0x71   :  { %837 = vmatprep.subr.bf16.mxu0 %v1076_v0  ;;  %p1047_p7 = por %p1046_p6, %p1045_p5 }
  0x73   :  { %p1048_p8 = pnand %p1047_p7, %p1041_p4 }
  0x74   :  { %838 = vmatpush3.bf16.msra.mxu0 %v920_v34 }
  0x75   :  { %839 = vmatprep.subr.bf16.mxu0 %v1076_v0 }
  0x78   :  { %840 = vmatpush3.bf16.msra.mxu0 %v921_v35 }
  0x79   :  { %841 = vmatprep.subr.bf16.mxu0 %v1076_v0 }
  0x7c   :  { %842 = vmatpush3.bf16.msra.mxu0 %v922_v36 }
  0x7d   :  { %843 = vmatprep.subr.bf16.mxu0 %v1076_v0 }
  0x80   :  { %844 = vmatpush3.bf16.msra.mxu0 %v923_v37 }
  0x81   :  { %845 = vmatprep.subr.bf16.mxu0 %v1076_v0 }
  0x84   :  { %846 = vmatpush3.bf16.msra.mxu0 %v924_v38 }
  0x85   :  { %847 = vmatprep.subr.bf16.mxu0 %v1076_v0 }
  0x88   :  { %848 = vmatpush3.bf16.msra.mxu0 %v925_v39 }
  0x89   :  { %873 = vmatprep.subr.bf16.mxu0 %v1076_v0 }
 0x13e   :  { %v202_v22 = vpop.f32.mrb[0].mxu0 }
 0x13f   :  { %v203_v23 = vadd.f32 %v703_v21, %v202_v22  ;;  %v811_v24 = vpop.f32.mrb[1].mxu0 }
 0x140   :  { %v205_v25 = vpop.f32.mrb[2].mxu0 }
 0x141   :  { %v209_v26 = vmul.f32 0.70710677, %v203_v23  ;;  %v812_v27 = vpop.f32.mrb[3].mxu0  ;;  %v208_v29 = vmul.f32 0.5, %v203_v23 }
 0x143   :  { %942 = verf.f32 %v209_v26 }
 0x14d   :  { %v943_v28 = vpop.eup %942 }
 0x14e   :  { %v211_v30 = vadd.f32 1.0, %v943_v28 }
 0x150   :  { %v212_v31 = vmul.f32 %v211_v30, %v208_v29 }
 0x152   :  { %v213_v32 = vadd.f32 %v212_v31, %v95_v11  ;;  %v739_v31 = vld [vmem:[%s1327_s10] ss:$0 sm:$0xff] }
 0x154   :  { %v214_v33 = vpack.c.bf16 %v213_v32, %v213_v32 }
 0x156   :  { %830 = vmatmul.mubr.bf16.vlgmr.msra.gmra.mrb[0].mxu1 %v214_v33 }
 0x157   :  { %869 = vmatprep.mubr.msk.bf16.mxu1 %vm1077_vm0, %v1076_v0  ;;  %854 = vmatpush3.bf16.msra.mxu1 %v926_v40 }
 0x158   :  { %855 = vmatprep.subr.bf16.mxu1 %v1076_v0 }
 0x15b   :  { %856 = vmatpush3.bf16.msra.mxu1 %v927_v41 }
 0x15c   :  { %857 = vmatprep.subr.bf16.mxu1 %v1076_v0 }
 0x15f   :  { %858 = vmatpush3.bf16.msra.mxu1 %v928_v55 }
 0x160   :  { %859 = vmatprep.subr.bf16.mxu1 %v1076_v0 }
 0x163   :  { %860 = vmatpush3.bf16.msra.mxu1 %v929_v56 }
 0x164   :  { %861 = vmatprep.subr.bf16.mxu1 %v1076_v0 }
 0x167   :  { %862 = vmatpush3.bf16.msra.mxu1 %v930_v57 }
 0x168   :  { %863 = vmatprep.subr.bf16.mxu1 %v1076_v0 }
 0x16b   :  { %864 = vmatpush3.bf16.msra.mxu1 %v931_v58 }
 0x16c   :  { %865 = vmatprep.subr.bf16.mxu1 %v1076_v0 }
 0x16f   :  { %866 = vmatpush3.bf16.msra.mxu1 %v932_v59 }
 0x170   :  { %867 = vmatprep.subr.bf16.mxu1 %v1076_v0 }
 0x173   :  { %868 = vmatpush3.bf16.msra.mxu1 %v933_v60 }
 0x229   :  { %v320_v43 = vpop.f32.mrb[0].mxu1 }
 0x22a   :  { %v321_v44 = vadd.f32 %v712_v42, %v320_v43  ;;  %v831_v45 = vpop.f32.mrb[1].mxu1 }
 0x22b   :  { %v323_v46 = vpop.f32.mrb[2].mxu1 }
 0x22c   :  { %v327_v47 = vmul.f32 0.70710677, %v321_v44  ;;  %v832_v48 = vpop.f32.mrb[3].mxu1  ;;  %v326_v50 = vmul.f32 0.5, %v321_v44 }
 0x22e   :  { %944 = verf.f32 %v327_v47 }
 0x238   :  { %v945_v49 = vpop.eup %944 }
 0x239   :  { %v329_v51 = vadd.f32 1.0, %v945_v49 }
 0x23b   :  { %v330_v52 = vmul.f32 %v329_v51, %v326_v50 }
 0x23d   :  { %v331_v53 = vadd.f32 %v330_v52, %v213_v32 }
 0x23f   :  { %v332_v54 = vpack.c.bf16 %v331_v53, %v331_v53 }
 0x241   :  { %850 = vmatmul.mubr.bf16.vlgmr.msra.gmra.mrb[4].mxu0 %v332_v54 }
 0x242   :  { %889 = vmatprep.mubr.msk.bf16.mxu0 %vm1077_vm0, %v1076_v0  ;;  %874 = vmatpush3.bf16.msra.mxu0 %v934_v61 }
 0x243   :  { %875 = vmatprep.subr.bf16.mxu0 %v1076_v0 }
 0x246   :  { %876 = vmatpush3.bf16.msra.mxu0 %v935_v62 }
 0x247   :  { %877 = vmatprep.subr.bf16.mxu0 %v1076_v0 }
 0x24a   :  { %878 = vmatpush3.bf16.msra.mxu0 %v936_v13 }
 0x24b   :  { %879 = vmatprep.subr.bf16.mxu0 %v1076_v0 }
 0x24e   :  { %880 = vmatpush3.bf16.msra.mxu0 %v937_v14 }
 0x24f   :  { %881 = vmatprep.subr.bf16.mxu0 %v1076_v0 }
 0x252   :  { %882 = vmatpush3.bf16.msra.mxu0 %v938_v15 }
 0x253   :  { %883 = vmatprep.subr.bf16.mxu0 %v1076_v0 }
 0x256   :  { %884 = vmatpush3.bf16.msra.mxu0 %v939_v16 }
 0x257   :  { %885 = vmatprep.subr.bf16.mxu0 %v1076_v0 }
 0x25a   :  { %886 = vmatpush3.bf16.msra.mxu0 %v940_v17 }
 0x25b   :  { %887 = vmatprep.subr.bf16.mxu0 %v1076_v0 }
 0x25e   :  { %888 = vmatpush3.bf16.msra.mxu0 %v941_v18 }
 0x314   :  { %v438_v1 = vpop.f32.mrb[4].mxu0 }
 0x315   :  { %v439_v2 = vadd.f32 %v721_v63, %v438_v1  ;;  %v851_v3 = vpop.f32.mrb[5].mxu0 }
 0x316   :  { %v441_v4 = vpop.f32.mrb[6].mxu0 }
 0x317   :  { %v445_v5 = vmul.f32 0.70710677, %v439_v2  ;;  %v852_v6 = vpop.f32.mrb[7].mxu0  ;;  %v444_v8 = vmul.f32 0.5, %v439_v2 }
 0x319   :  { %946 = verf.f32 %v445_v5 }
 0x323   :  { %v947_v7 = vpop.eup %946 }
 0x324   :  { %v447_v9 = vadd.f32 1.0, %v947_v7 }
 0x326   :  { %v448_v10 = vmul.f32 %v447_v9, %v444_v8 }
 0x328   :  { %v449_v11 = vadd.f32 %v448_v10, %v331_v53 }
 0x32a   :  { %v450_v12 = vpack.c.bf16 %v449_v11, %v449_v11 }
 0x32c   :  { %870 = vmatmul.mubr.bf16.vlgmr.msra.gmra.mrb[4].mxu1 %v450_v12 }
 0x3ff   :  { %v556_v20 = vpop.f32.mrb[4].mxu1 }
 0x400   :  { %v557_v21 = vadd.f32 %v730_v19, %v556_v20  ;;  %v871_v22 = vpop.f32.mrb[5].mxu1 }
 0x401   :  { %v559_v23 = vpop.f32.mrb[6].mxu1 }
 0x402   :  { %v563_v24 = vmul.f32 0.70710677, %v557_v21  ;;  %v872_v25 = vpop.f32.mrb[7].mxu1  ;;  %v562_v27 = vmul.f32 0.5, %v557_v21 }
 0x404   :  { %948 = verf.f32 %v563_v24 }
 0x40e   :  { %v949_v26 = vpop.eup %948 }
 0x40f   :  { %v565_v28 = vadd.f32 1.0, %v949_v26 }
 0x411   :  { %v566_v0 = vmul.f32 %v565_v28, %v562_v27 }
 0x413   :  { %v567_v29 = vadd.f32 %v566_v0, %v449_v11 }
 0x415   :  { %v568_v30 = vpack.c.bf16 %v567_v29, %v567_v29 }
 0x417   :  { %890 = vmatmul.mubr.bf16.vlgmr.msra.gmra.mrb[8].mxu0 %v568_v30 }
 0x4ea   :  { %v674_v32 = vpop.f32.mrb[8].mxu0 }
 0x4eb   :  { %v675_v33 = vadd.f32 %v739_v31, %v674_v32  ;;  %v891_v34 = vpop.f32.mrb[9].mxu0 }
 0x4ec   :  { %v677_v35 = vpop.f32.mrb[10].mxu0 }
 0x4ed   :  { %v681_v36 = vmul.f32 0.70710677, %v675_v33  ;;  %v892_v37 = vpop.f32.mrb[11].mxu0  ;;  %v680_v39 = vmul.f32 0.5, %v675_v33 }
 0x4ef   :  { %950 = verf.f32 %v681_v36 }
 0x4f9   :  { %v951_v38 = vpop.eup %950 }
 0x4fa   :  { %v683_v40 = vadd.f32 1.0, %v951_v38 }
 0x4fc   :  { %v684_v41 = vmul.f32 %v683_v40, %v680_v39 }
 0x4fe   :  { %685 = vst [vmem:[#allocation10] sm:$0xff] %v684_v41 }
 0x4ff   :  { %1051 = shalt.err (!%p1048_p8)
}
 0x500   :  { %s1052_s30 = scalar_lea.hbm %s1328_s11, 128 }
 0x501   :  { %p1053_p9 = scmp.ne.s32.totalorder %s1328_s11, %s1052_s30  ;;  %p1056_p10 = scmp.lt.u32.totalorder %s1052_s30, %s1328_s11 }
 0x503   :  { %p1058_p11 = pnand %p1056_p10, %p1053_p9 }
 0x505   :  { %1061 = shalt.err (!%p1058_p11)
}
 0x506   :  { %695 = dma.vmem_to_hbm [thread:$0]  %s693_s4, 128, %s1328_s11, [#allocation4]  }
 0x507   :  { %1068 = dma.done.wait [#allocation4], 128  }
 0x508   :  { %1069 = vsyncadd [#allocation4], 4294967168 }
 0x509   :  { %699 = vsyncpa [#allocation3], 1 }
 0x50a   :  { %700 = vsyncpa [#allocation6], 1 }
 0x50b   :  { %701 = vsyncpa [#allocation9], 1 }
 0x50c   :  { %702 = vsyncpa [#allocation4], 1 }

</bundles_post_ra>
